<compile_context>
chip_gen: v7x
topology: tpu7x:2x2x1
jax: 0.10.0
libtpu: 0.0.40
codegen_flags: <defaults>
</compile_context>

<pallas_src>
import math
from functools import partial

import jax
import jax.numpy as jnp
from jax.experimental import pallas as pl
from jax.experimental.pallas import tpu as pltpu


def _vae_kernel(
    xc_ref, c_ref, eps_ref,
    w1_ref, b1_ref,            # fc1: (h1, x_dim+c_dim), (h1, 1)
    w2_ref, b2_ref,            # fc2: (h2, h1), (h2, 1)
    w3_ref, b3_ref,            # fc31|fc32 fused: (2*z, h2), (2*z, 1)
    w4z_ref, w4c_ref, b4_ref,  # fc4 split: (h2, z), (h2, c), (h2, 1)
    w5_ref, b5_ref,            # fc5: (h1, h2), (h1, 1)
    w6_ref, b6_ref,            # fc6: (x_dim, h1), (x_dim, 1)
    out_ref,                   # (x_dim + 2*z, tile)  ->  [recon; mu; log_var]
    *, mxu_dtype,
):
    xc = xc_ref[...]           # (x_dim+c_dim, tn)  f32, batch on lanes
    c = c_ref[...]             # (c_dim, tn)
    eps = eps_ref[...]         # (z_dim, tn)

    z_dim = eps.shape[0]
    x_dim = out_ref.shape[0] - 2 * z_dim

    def mm(w, v):
        # MXU matmul; N (lane) dimension is the batch tile -> full-width.
        return jnp.dot(w.astype(mxu_dtype), v.astype(mxu_dtype),
                       preferred_element_type=jnp.float32)

    # ---- encoder -----------------------------------------------------------
    h = jnp.maximum(mm(w1_ref[...], xc) + b1_ref[...], 0.0)     # (h1, tn)
    h = jnp.maximum(mm(w2_ref[...], h) + b2_ref[...], 0.0)      # (h2, tn)

    # fc31 / fc32 fused into one (2z, h2) matmul; split along sublanes.
    mlv = mm(w3_ref[...], h) + b3_ref[...]                      # (2z, tn)
    mu = mlv[:z_dim, :]
    log_var = mlv[z_dim:, :]

    # ---- reparameterization (VPU + EUP, lane-dense, kept in f32) -----------
    z = eps * jnp.exp(0.5 * log_var) + mu                       # (z, tn)

    # ---- decoder ------------------------------------------------------------
    # fc4 with split weights: no in-kernel concat((z, c)) needed.
    d = mm(w4z_ref[...], z) + mm(w4c_ref[...], c) + b4_ref[...]  # (h2, tn)
    d = jnp.maximum(d, 0.0)
    d = jnp.maximum(mm(w5_ref[...], d) + b5_ref[...], 0.0)       # (h1, tn)
    recon = jnp.maximum(mm(w6_ref[...], d) + b6_ref[...], 0.0)   # (x, tn)

    # Single fused output slab: [recon; mu; log_var], one writeback per step.
    out_ref[0:x_dim, :] = recon.astype(out_ref.dtype)
    out_ref[x_dim:x_dim + z_dim, :] = mu.astype(out_ref.dtype)
    out_ref[x_dim + z_dim:, :] = log_var.astype(out_ref.dtype)


def init_vae_params(key, x_dim, h_dim1, h_dim2, z_dim, c_dim):
    """PyTorch nn.Linear default init (uniform +-1/sqrt(fan_in)).

    Weights kept in PyTorch layout (out_f, in_f); biases stored as (out_f, 1)
    columns (broadcast over the lane/batch axis inside the kernel)."""

    def linear(k, in_f, out_f):
        kw, kb = jax.random.split(k)
        bound = 1.0 / math.sqrt(in_f)
        w = jax.random.uniform(kw, (out_f, in_f), jnp.float32, -bound, bound)
        b = jax.random.uniform(kb, (out_f, 1), jnp.float32, -bound, bound)
        return w, b

    k1, k2, k31, k32, k4, k5, k6 = jax.random.split(key, 7)
    w1, b1 = linear(k1, x_dim + c_dim, h_dim1)
    w2, b2 = linear(k2, h_dim1, h_dim2)
    w31, b31 = linear(k31, h_dim2, z_dim)
    w32, b32 = linear(k32, h_dim2, z_dim)
    w4, b4 = linear(k4, z_dim + c_dim, h_dim2)
    w5, b5 = linear(k5, h_dim2, h_dim1)
    w6, b6 = linear(k6, h_dim1, x_dim)

    # Fuse fc31 / fc32 into one wider projection: (2*z, h2), (2*z, 1).
    w3 = jnp.concatenate([w31, w32], axis=0)
    b3 = jnp.concatenate([b31, b32], axis=0)

    # Split fc4 so the kernel never has to concat (z, c).
    w4z, w4c = w4[:, :z_dim], w4[:, z_dim:]

    return {
        "w1": w1, "b1": b1,
        "w2": w2, "b2": b2,
        "w3": w3, "b3": b3,
        "w4z": w4z, "w4c": w4c, "b4": b4,
        "w5": w5, "b5": b5,
        "w6": w6, "b6": b6,
        "x_dim": x_dim, "z_dim": z_dim, "c_dim": c_dim,
    }


def _round_up(a, b):
    return ((a + b - 1) // b) * b


def vae_forward(x, c_idx, eps, params, *, tile_n=1024, mxu_dtype=jnp.float32):
    """Full VAE forward: returns (x_hat, mu, log_var), matching VAE.forward.

    tile_n: batch rows per grid step (rounded up to a multiple of 128; small
            batches are zero-padded and run as a single tile).
    mxu_dtype: set to jnp.bfloat16 on v6e/v7x for faster MXU passes (loosens
            numerics to ~1e-2 relative); f32 default is exact.
    """
    n, x_dim = x.shape
    z_dim = params["z_dim"]
    c_dim = params["c_dim"]

    # idx2onehot(c, n=c_dim) done host/XLA side.
    c_onehot = jax.nn.one_hot(c_idx, c_dim, dtype=x.dtype)

    # Feature-minor layout: (feature, N) with N on the 128-lane axis.
    tile = _round_up(min(tile_n, _round_up(n, 128)), 128)
    n_pad = _round_up(n, tile)

    def to_feature_minor(a):  # (n, f) -> (f, n_pad), zero-padded columns
        a_t = a.T
        if n_pad != n:
            a_t = jnp.pad(a_t, ((0, 0), (0, n_pad - n)))
        return a_t

    xc_t = to_feature_minor(jnp.concatenate([x, c_onehot], axis=-1))
    c_t = to_feature_minor(c_onehot)
    eps_t = to_feature_minor(eps)

    weight_args = (
        params["w1"], params["b1"],
        params["w2"], params["b2"],
        params["w3"], params["b3"],
        params["w4z"], params["w4c"], params["b4"],
        params["w5"], params["b5"],
        params["w6"], params["b6"],
    )

    col_map = lambda i: (0, i)     # batch tiles march along the lane axis
    fixed_map = lambda i: (0, 0)   # weights stay resident

    in_specs = [
        pl.BlockSpec((x_dim + c_dim, tile), col_map),
        pl.BlockSpec((c_dim, tile), col_map),
        pl.BlockSpec((z_dim, tile), col_map),
    ] + [pl.BlockSpec(w.shape, fixed_map) for w in weight_args]

    out_dim = x_dim + 2 * z_dim
    out_specs = pl.BlockSpec((out_dim, tile), col_map)
    out_shape = jax.ShapeDtypeStruct((out_dim, n_pad), x.dtype)

    slab = pl.pallas_call(
        partial(_vae_kernel, mxu_dtype=mxu_dtype),
        out_shape=out_shape,
        grid=(n_pad // tile,),
        in_specs=in_specs,
        out_specs=out_specs,
        compiler_params=pltpu.CompilerParams(
            dimension_semantics=("parallel",),  # batch tiles shard across TCs (v7x)
        ),
    )(xc_t, c_t, eps_t, *weight_args)

    recon = slab[:x_dim, :n].T
    mu = slab[x_dim:x_dim + z_dim, :n].T
    log_var = slab[x_dim + z_dim:, :n].T
    return recon, mu, log_var


def vae_forward_ref(x, c_idx, eps, params):
    """Pure-JAX reference (same math as the PyTorch module's forward)."""
    z_dim = params["z_dim"]
    hp = jax.lax.Precision.HIGHEST
    c = jax.nn.one_hot(c_idx, params["c_dim"], dtype=x.dtype)
    xc = jnp.concatenate([x, c], axis=-1)
    h = jax.nn.relu(jnp.dot(xc, params["w1"].T, precision=hp) + params["b1"].T)
    h = jax.nn.relu(jnp.dot(h, params["w2"].T, precision=hp) + params["b2"].T)
    mlv = jnp.dot(h, params["w3"].T, precision=hp) + params["b3"].T
    mu, log_var = mlv[:, :z_dim], mlv[:, z_dim:]
    z = eps * jnp.exp(0.5 * log_var) + mu
    d = (jnp.dot(z, params["w4z"].T, precision=hp)
         + jnp.dot(c, params["w4c"].T, precision=hp) + params["b4"].T)
    d = jax.nn.relu(d)
    d = jax.nn.relu(jnp.dot(d, params["w5"].T, precision=hp) + params["b5"].T)
    recon = jax.nn.relu(jnp.dot(d, params["w6"].T, precision=hp) + params["b6"].T)
    return recon, mu, log_var


if __name__ == "__main__":
    key = jax.random.PRNGKey(0)
    k_x, k_c, k_eps, k_p = jax.random.split(key, 4)

    # Small shapes implied by the module: x.view(-1, 2) -> x_dim = 2,
    # idx2onehot(c, n=2) -> c_dim = 2; hidden = 32, z_dim = 2, batch = 8.
    N, X_DIM, C_DIM, H1, H2, Z_DIM = 8, 2, 2, 32, 32, 2

    x = jax.random.normal(k_x, (N, X_DIM), dtype=jnp.float32)
    c_idx = jax.random.randint(k_c, (N,), 0, C_DIM)
    eps = jax.random.normal(k_eps, (N, Z_DIM), dtype=jnp.float32)  # randn_like(std)
    params = init_vae_params(k_p, X_DIM, H1, H2, Z_DIM, C_DIM)

    recon, mu, log_var = vae_forward(x, c_idx, eps, params)
    recon, mu, log_var = jax.block_until_ready((recon, mu, log_var))

    r_ref, mu_ref, lv_ref = vae_forward_ref(x, c_idx, eps, params)
    assert recon.shape == (N, X_DIM)
    assert mu.shape == (N, Z_DIM) and log_var.shape == (N, Z_DIM)
    assert jnp.allclose(recon, r_ref, atol=1e-4, rtol=1e-4)
    assert jnp.allclose(mu, mu_ref, atol=1e-4, rtol=1e-4)
    assert jnp.allclose(log_var, lv_ref, atol=1e-4, rtol=1e-4)

    # TODO(synk): gaussian_likelihood is not part of forward(); left to XLA.
    print("KERNEL_OK")
</pallas_src>

<mosaic_0001>
module attributes {stable_mosaic.version = 11 : i64} {
  func.func @_vae_kernel(%arg0: i32, %arg1: memref<4x128xf32, #tpu.memory_space<vmem>>, %arg2: memref<2x128xf32, #tpu.memory_space<vmem>>, %arg3: memref<2x128xf32, #tpu.memory_space<vmem>>, %arg4: memref<32x4xf32, #tpu.memory_space<vmem>>, %arg5: memref<32x1xf32, #tpu.memory_space<vmem>>, %arg6: memref<32x32xf32, #tpu.memory_space<vmem>>, %arg7: memref<32x1xf32, #tpu.memory_space<vmem>>, %arg8: memref<4x32xf32, #tpu.memory_space<vmem>>, %arg9: memref<4x1xf32, #tpu.memory_space<vmem>>, %arg10: memref<32x2xf32, #tpu.memory_space<vmem>>, %arg11: memref<32x2xf32, #tpu.memory_space<vmem>>, %arg12: memref<32x1xf32, #tpu.memory_space<vmem>>, %arg13: memref<32x32xf32, #tpu.memory_space<vmem>>, %arg14: memref<32x1xf32, #tpu.memory_space<vmem>>, %arg15: memref<2x32xf32, #tpu.memory_space<vmem>>, %arg16: memref<2x1xf32, #tpu.memory_space<vmem>>, %arg17: memref<6x128xf32, #tpu.memory_space<vmem>>) attributes {dimension_semantics = [#tpu.dimension_semantics<parallel>], iteration_bounds = array<i64: 1>, scalar_prefetch = 0 : i64, scratch_operands = 0 : i64, tpu.core_type = #tpu.core_type<tc>, window_params = [{transform_indices = @transform_0, window_bounds = array<i64: 4, 128>}, {transform_indices = @transform_1, window_bounds = array<i64: 2, 128>}, {transform_indices = @transform_2, window_bounds = array<i64: 2, 128>}, {pipeline_mode = #tpu.pipeline_mode<synchronous>, transform_indices = @transform_3, window_bounds = array<i64: 32, 4>}, {pipeline_mode = #tpu.pipeline_mode<synchronous>, transform_indices = @transform_4, window_bounds = array<i64: 32, 1>}, {pipeline_mode = #tpu.pipeline_mode<synchronous>, transform_indices = @transform_5, window_bounds = array<i64: 32, 32>}, {pipeline_mode = #tpu.pipeline_mode<synchronous>, transform_indices = @transform_6, window_bounds = array<i64: 32, 1>}, {pipeline_mode = #tpu.pipeline_mode<synchronous>, transform_indices = @transform_7, window_bounds = array<i64: 4, 32>}, {pipeline_mode = #tpu.pipeline_mode<synchronous>, transform_indices = @transform_8, window_bounds = array<i64: 4, 1>}, {pipeline_mode = #tpu.pipeline_mode<synchronous>, transform_indices = @transform_9, window_bounds = array<i64: 32, 2>}, {pipeline_mode = #tpu.pipeline_mode<synchronous>, transform_indices = @transform_10, window_bounds = array<i64: 32, 2>}, {pipeline_mode = #tpu.pipeline_mode<synchronous>, transform_indices = @transform_11, window_bounds = array<i64: 32, 1>}, {pipeline_mode = #tpu.pipeline_mode<synchronous>, transform_indices = @transform_12, window_bounds = array<i64: 32, 32>}, {pipeline_mode = #tpu.pipeline_mode<synchronous>, transform_indices = @transform_13, window_bounds = array<i64: 32, 1>}, {pipeline_mode = #tpu.pipeline_mode<synchronous>, transform_indices = @transform_14, window_bounds = array<i64: 2, 32>}, {pipeline_mode = #tpu.pipeline_mode<synchronous>, transform_indices = @transform_15, window_bounds = array<i64: 2, 1>}, {transform_indices = @transform_16, window_bounds = array<i64: 6, 128>}]} {
    %c0 = arith.constant 0 : index
    %c0_0 = arith.constant 0 : index
    %0 = vector.load %arg1[%c0, %c0_0] : memref<4x128xf32, #tpu.memory_space<vmem>>, vector<4x128xf32>
    %c0_1 = arith.constant 0 : index
    %c0_2 = arith.constant 0 : index
    %1 = vector.load %arg2[%c0_1, %c0_2] : memref<2x128xf32, #tpu.memory_space<vmem>>, vector<2x128xf32>
    %c0_3 = arith.constant 0 : index
    %c0_4 = arith.constant 0 : index
    %2 = vector.load %arg3[%c0_3, %c0_4] : memref<2x128xf32, #tpu.memory_space<vmem>>, vector<2x128xf32>
    %c0_5 = arith.constant 0 : index
    %c0_6 = arith.constant 0 : index
    %3 = vector.load %arg4[%c0_5, %c0_6] : memref<32x4xf32, #tpu.memory_space<vmem>>, vector<32x4xf32>
    %cst = arith.constant dense<0.000000e+00> : vector<32x128xf32>
    %4 = tpu.matmul %3, %0, %cst {dimension_numbers = #tpu.dot_dimension_numbers<[1], [0], [0], [1], [0, 0, 1, 1], [], []>} : vector<32x4xf32>, vector<4x128xf32>, vector<32x128xf32> -> vector<32x128xf32>
    %c0_7 = arith.constant 0 : index
    %c0_8 = arith.constant 0 : index
    %5 = vector.load %arg5[%c0_7, %c0_8] : memref<32x1xf32, #tpu.memory_space<vmem>>, vector<32x1xf32>
    %6 = vector.broadcast %5 : vector<32x1xf32> to vector<32x128xf32>
    %7 = arith.addf %4, %6 : vector<32x128xf32>
    %cst_9 = arith.constant 0.000000e+00 : f32
    %8 = vector.broadcast %cst_9 : f32 to vector<32x128xf32>
    %9 = arith.maximumf %7, %8 : vector<32x128xf32>
    %c0_10 = arith.constant 0 : index
    %c0_11 = arith.constant 0 : index
    %10 = vector.load %arg6[%c0_10, %c0_11] : memref<32x32xf32, #tpu.memory_space<vmem>>, vector<32x32xf32>
    %cst_12 = arith.constant dense<0.000000e+00> : vector<32x128xf32>
    %11 = tpu.matmul %10, %9, %cst_12 {dimension_numbers = #tpu.dot_dimension_numbers<[1], [0], [0], [1], [0, 0, 1, 1], [], []>} : vector<32x32xf32>, vector<32x128xf32>, vector<32x128xf32> -> vector<32x128xf32>
    %c0_13 = arith.constant 0 : index
    %c0_14 = arith.constant 0 : index
    %12 = vector.load %arg7[%c0_13, %c0_14] : memref<32x1xf32, #tpu.memory_space<vmem>>, vector<32x1xf32>
    %13 = vector.broadcast %12 : vector<32x1xf32> to vector<32x128xf32>
    %14 = arith.addf %11, %13 : vector<32x128xf32>
    %cst_15 = arith.constant 0.000000e+00 : f32
    %15 = vector.broadcast %cst_15 : f32 to vector<32x128xf32>
    %16 = arith.maximumf %14, %15 : vector<32x128xf32>
    %c0_16 = arith.constant 0 : index
    %c0_17 = arith.constant 0 : index
    %17 = vector.load %arg8[%c0_16, %c0_17] : memref<4x32xf32, #tpu.memory_space<vmem>>, vector<4x32xf32>
    %cst_18 = arith.constant dense<0.000000e+00> : vector<4x128xf32>
    %18 = tpu.matmul %17, %16, %cst_18 {dimension_numbers = #tpu.dot_dimension_numbers<[1], [0], [0], [1], [0, 0, 1, 1], [], []>} : vector<4x32xf32>, vector<32x128xf32>, vector<4x128xf32> -> vector<4x128xf32>
    %c0_19 = arith.constant 0 : index
    %c0_20 = arith.constant 0 : index
    %19 = vector.load %arg9[%c0_19, %c0_20] : memref<4x1xf32, #tpu.memory_space<vmem>>, vector<4x1xf32>
    %20 = vector.broadcast %19 : vector<4x1xf32> to vector<4x128xf32>
    %21 = arith.addf %18, %20 : vector<4x128xf32>
    %22 = vector.extract_strided_slice %21 {offsets = [0, 0], sizes = [2, 128], strides = [1, 1]} : vector<4x128xf32> to vector<2x128xf32>
    %23 = vector.extract_strided_slice %21 {offsets = [2, 0], sizes = [2, 128], strides = [1, 1]} : vector<4x128xf32> to vector<2x128xf32>
    %cst_21 = arith.constant 5.000000e-01 : f32
    %24 = vector.broadcast %cst_21 : f32 to vector<2x128xf32>
    %25 = arith.mulf %24, %23 : vector<2x128xf32>
    %26 = math.exp %25 : vector<2x128xf32>
    %27 = arith.mulf %2, %26 : vector<2x128xf32>
    %28 = arith.addf %27, %22 : vector<2x128xf32>
    %c0_22 = arith.constant 0 : index
    %c0_23 = arith.constant 0 : index
    %29 = vector.load %arg10[%c0_22, %c0_23] : memref<32x2xf32, #tpu.memory_space<vmem>>, vector<32x2xf32>
    %cst_24 = arith.constant dense<0.000000e+00> : vector<32x128xf32>
    %30 = tpu.matmul %29, %28, %cst_24 {dimension_numbers = #tpu.dot_dimension_numbers<[1], [0], [0], [1], [0, 0, 1, 1], [], []>} : vector<32x2xf32>, vector<2x128xf32>, vector<32x128xf32> -> vector<32x128xf32>
    %c0_25 = arith.constant 0 : index
    %c0_26 = arith.constant 0 : index
    %31 = vector.load %arg11[%c0_25, %c0_26] : memref<32x2xf32, #tpu.memory_space<vmem>>, vector<32x2xf32>
    %cst_27 = arith.constant dense<0.000000e+00> : vector<32x128xf32>
    %32 = tpu.matmul %31, %1, %cst_27 {dimension_numbers = #tpu.dot_dimension_numbers<[1], [0], [0], [1], [0, 0, 1, 1], [], []>} : vector<32x2xf32>, vector<2x128xf32>, vector<32x128xf32> -> vector<32x128xf32>
    %33 = arith.addf %30, %32 : vector<32x128xf32>
    %c0_28 = arith.constant 0 : index
    %c0_29 = arith.constant 0 : index
    %34 = vector.load %arg12[%c0_28, %c0_29] : memref<32x1xf32, #tpu.memory_space<vmem>>, vector<32x1xf32>
    %35 = vector.broadcast %34 : vector<32x1xf32> to vector<32x128xf32>
    %36 = arith.addf %33, %35 : vector<32x128xf32>
    %cst_30 = arith.constant 0.000000e+00 : f32
    %37 = vector.broadcast %cst_30 : f32 to vector<32x128xf32>
    %38 = arith.maximumf %36, %37 : vector<32x128xf32>
    %c0_31 = arith.constant 0 : index
    %c0_32 = arith.constant 0 : index
    %39 = vector.load %arg13[%c0_31, %c0_32] : memref<32x32xf32, #tpu.memory_space<vmem>>, vector<32x32xf32>
    %cst_33 = arith.constant dense<0.000000e+00> : vector<32x128xf32>
    %40 = tpu.matmul %39, %38, %cst_33 {dimension_numbers = #tpu.dot_dimension_numbers<[1], [0], [0], [1], [0, 0, 1, 1], [], []>} : vector<32x32xf32>, vector<32x128xf32>, vector<32x128xf32> -> vector<32x128xf32>
    %c0_34 = arith.constant 0 : index
    %c0_35 = arith.constant 0 : index
    %41 = vector.load %arg14[%c0_34, %c0_35] : memref<32x1xf32, #tpu.memory_space<vmem>>, vector<32x1xf32>
    %42 = vector.broadcast %41 : vector<32x1xf32> to vector<32x128xf32>
    %43 = arith.addf %40, %42 : vector<32x128xf32>
    %cst_36 = arith.constant 0.000000e+00 : f32
    %44 = vector.broadcast %cst_36 : f32 to vector<32x128xf32>
    %45 = arith.maximumf %43, %44 : vector<32x128xf32>
    %c0_37 = arith.constant 0 : index
    %c0_38 = arith.constant 0 : index
    %46 = vector.load %arg15[%c0_37, %c0_38] : memref<2x32xf32, #tpu.memory_space<vmem>>, vector<2x32xf32>
    %cst_39 = arith.constant dense<0.000000e+00> : vector<2x128xf32>
    %47 = tpu.matmul %46, %45, %cst_39 {dimension_numbers = #tpu.dot_dimension_numbers<[1], [0], [0], [1], [0, 0, 1, 1], [], []>} : vector<2x32xf32>, vector<32x128xf32>, vector<2x128xf32> -> vector<2x128xf32>
    %c0_40 = arith.constant 0 : index
    %c0_41 = arith.constant 0 : index
    %48 = vector.load %arg16[%c0_40, %c0_41] : memref<2x1xf32, #tpu.memory_space<vmem>>, vector<2x1xf32>
    %49 = vector.broadcast %48 : vector<2x1xf32> to vector<2x128xf32>
    %50 = arith.addf %47, %49 : vector<2x128xf32>
    %cst_42 = arith.constant 0.000000e+00 : f32
    %51 = vector.broadcast %cst_42 : f32 to vector<2x128xf32>
    %52 = arith.maximumf %50, %51 : vector<2x128xf32>
    %c0_43 = arith.constant 0 : index
    %c0_44 = arith.constant 0 : index
    %53 = vector.load %arg17[%c0_43, %c0_44] : memref<6x128xf32, #tpu.memory_space<vmem>>, vector<2x128xf32>
    tpu.vector_store %arg17[%c0_43, %c0_44], %52 {strides = array<i32>} : memref<6x128xf32, #tpu.memory_space<vmem>>, vector<2x128xf32>,
    %c2 = arith.constant 2 : index
    %c0_45 = arith.constant 0 : index
    %54 = vector.load %arg17[%c2, %c0_45] : memref<6x128xf32, #tpu.memory_space<vmem>>, vector<2x128xf32>
    tpu.vector_store %arg17[%c2, %c0_45], %22 {strides = array<i32>} : memref<6x128xf32, #tpu.memory_space<vmem>>, vector<2x128xf32>,
    %c4 = arith.constant 4 : index
    %c0_46 = arith.constant 0 : index
    %55 = vector.load %arg17[%c4, %c0_46] : memref<6x128xf32, #tpu.memory_space<vmem>>, vector<2x128xf32>
    tpu.vector_store %arg17[%c4, %c0_46], %23 {strides = array<i32>} : memref<6x128xf32, #tpu.memory_space<vmem>>, vector<2x128xf32>,
    return
  }
  func.func @transform_0(%arg0: i32) -> (i32, i32) {
    %c0_i32 = arith.constant 0 : i32
    %c0_i32_0 = arith.constant 0 : i32
    return %c0_i32, %arg0 : i32, i32
  }
  func.func @transform_1(%arg0: i32) -> (i32, i32) {
    %c0_i32 = arith.constant 0 : i32
    %c0_i32_0 = arith.constant 0 : i32
    return %c0_i32, %arg0 : i32, i32
  }
  func.func @transform_2(%arg0: i32) -> (i32, i32) {
    %c0_i32 = arith.constant 0 : i32
    %c0_i32_0 = arith.constant 0 : i32
    return %c0_i32, %arg0 : i32, i32
  }
  func.func @transform_3(%arg0: i32) -> (i32, i32) {
    %c0_i32 = arith.constant 0 : i32
    %c0_i32_0 = arith.constant 0 : i32
    %c0_i32_1 = arith.constant 0 : i32
    return %c0_i32, %c0_i32_0 : i32, i32
  }
  func.func @transform_4(%arg0: i32) -> (i32, i32) {
    %c0_i32 = arith.constant 0 : i32
    %c0_i32_0 = arith.constant 0 : i32
    %c0_i32_1 = arith.constant 0 : i32
    return %c0_i32, %c0_i32_0 : i32, i32
  }
  func.func @transform_5(%arg0: i32) -> (i32, i32) {
    %c0_i32 = arith.constant 0 : i32
    %c0_i32_0 = arith.constant 0 : i32
    %c0_i32_1 = arith.constant 0 : i32
    return %c0_i32, %c0_i32_0 : i32, i32
  }
  func.func @transform_6(%arg0: i32) -> (i32, i32) {
    %c0_i32 = arith.constant 0 : i32
    %c0_i32_0 = arith.constant 0 : i32
    %c0_i32_1 = arith.constant 0 : i32
    return %c0_i32, %c0_i32_0 : i32, i32
  }
  func.func @transform_7(%arg0: i32) -> (i32, i32) {
    %c0_i32 = arith.constant 0 : i32
    %c0_i32_0 = arith.constant 0 : i32
    %c0_i32_1 = arith.constant 0 : i32
    return %c0_i32, %c0_i32_0 : i32, i32
  }
  func.func @transform_8(%arg0: i32) -> (i32, i32) {
    %c0_i32 = arith.constant 0 : i32
    %c0_i32_0 = arith.constant 0 : i32
    %c0_i32_1 = arith.constant 0 : i32
    return %c0_i32, %c0_i32_0 : i32, i32
  }
  func.func @transform_9(%arg0: i32) -> (i32, i32) {
    %c0_i32 = arith.constant 0 : i32
    %c0_i32_0 = arith.constant 0 : i32
    %c0_i32_1 = arith.constant 0 : i32
    return %c0_i32, %c0_i32_0 : i32, i32
  }
  func.func @transform_10(%arg0: i32) -> (i32, i32) {
    %c0_i32 = arith.constant 0 : i32
    %c0_i32_0 = arith.constant 0 : i32
    %c0_i32_1 = arith.constant 0 : i32
    return %c0_i32, %c0_i32_0 : i32, i32
  }
  func.func @transform_11(%arg0: i32) -> (i32, i32) {
    %c0_i32 = arith.constant 0 : i32
    %c0_i32_0 = arith.constant 0 : i32
    %c0_i32_1 = arith.constant 0 : i32
    return %c0_i32, %c0_i32_0 : i32, i32
  }
  func.func @transform_12(%arg0: i32) -> (i32, i32) {
    %c0_i32 = arith.constant 0 : i32
    %c0_i32_0 = arith.constant 0 : i32
    %c0_i32_1 = arith.constant 0 : i32
    return %c0_i32, %c0_i32_0 : i32, i32
  }
  func.func @transform_13(%arg0: i32) -> (i32, i32) {
    %c0_i32 = arith.constant 0 : i32
    %c0_i32_0 = arith.constant 0 : i32
    %c0_i32_1 = arith.constant 0 : i32
    return %c0_i32, %c0_i32_0 : i32, i32
  }
  func.func @transform_14(%arg0: i32) -> (i32, i32) {
    %c0_i32 = arith.constant 0 : i32
    %c0_i32_0 = arith.constant 0 : i32
    %c0_i32_1 = arith.constant 0 : i32
    return %c0_i32, %c0_i32_0 : i32, i32
  }
  func.func @transform_15(%arg0: i32) -> (i32, i32) {
    %c0_i32 = arith.constant 0 : i32
    %c0_i32_0 = arith.constant 0 : i32
    %c0_i32_1 = arith.constant 0 : i32
    return %c0_i32, %c0_i32_0 : i32, i32
  }
  func.func @transform_16(%arg0: i32) -> (i32, i32) {
    %c0_i32 = arith.constant 0 : i32
    %c0_i32_0 = arith.constant 0 : i32
    return %c0_i32, %arg0 : i32, i32
  }
}

</mosaic_0001>

<bundles_post_ra>
// kernel: tpu_custom_call.1
= control target key start
LH: loop header
LB: loop body
LE: loop exit
PB: predicated region body
PF: predicated region fallthrough
CT: control target
= control target key end

     0   :  { %s1348_s0 = inlined_call_operand.vmem [shape: f32[4,128], index: 0, kind: input, shape index: {}]   ;;  %s1349_s1 = inlined_call_operand.vmem [shape: f32[2,128], index: 1, kind: input, shape index: {}]   ;;  %s1350_s2 = inlined_call_operand.vmem [shape: f32[2,128], index: 2, kind: input, shape index: {}]   ;;  %s1351_s3 = inlined_call_operand.vmem [shape: f32[32,4], index: 3, kind: input, shape index: {}]   ;;  %s1352_s4 = inlined_call_operand.vmem [shape: f32[32,1], index: 4, kind: input, shape index: {}]   ;;  %s1353_s5 = inlined_call_operand.vmem [shape: f32[32,32], index: 5, kind: input, shape index: {}]   ;;  %s1354_s6 = inlined_call_operand.vmem [shape: f32[32,1], index: 6, kind: input, shape index: {}]   ;;  %s1355_s7 = inlined_call_operand.vmem [shape: f32[4,32], index: 7, kind: input, shape index: {}]   ;;  %s1356_s8 = inlined_call_operand.vmem [shape: f32[4,1], index: 8, kind: input, shape index: {}]   ;;  %s1357_s9 = inlined_call_operand.vmem [shape: f32[32,2], index: 9, kind: input, shape index: {}]   ;;  %s1358_s10 = inlined_call_operand.vmem [shape: f32[32,2], index: 10, kind: input, shape index: {}]   ;;  %s1359_s11 = inlined_call_operand.vmem [shape: f32[32,1], index: 11, kind: input, shape index: {}]   ;;  %s1360_s12 = inlined_call_operand.vmem [shape: f32[32,32], index: 12, kind: input, shape index: {}]   ;;  %s1361_s13 = inlined_call_operand.vmem [shape: f32[32,1], index: 13, kind: input, shape index: {}]   ;;  %s1362_s14 = inlined_call_operand.vmem [shape: f32[2,32], index: 14, kind: input, shape index: {}]   ;;  %s1363_s15 = inlined_call_operand.vmem [shape: f32[2,1], index: 15, kind: input, shape index: {}]   ;;  %s1364_s16 = inlined_call_operand.hbm [shape: f32[6,128], index: 16, kind: output, shape index: {}]  }
   0x1   :  { %1365 = sst [smem:[#allocation5_spill]] %s1348_s0 }
   0x2   :  { %s1366_s23 = sld [smem:[#allocation5_spill]]  ;;  %vm98_vm0 = vcmask 1043456   ;;  %v57_v1 = vld [vmem:[%s1351_s3] sm:$0xff]  ;;  %vm85_vm1 = vcmask 31744   ;;  %v58_v2 = vld [vmem:[%s1351_s3 + $0x8] sm:$0xff]  ;;  %v59_v3 = vld [vmem:[%s1351_s3 + $0x10] sm:$0xff] }
   0x3   :  { %946 = vmatprep.mubr.msk.f32.mxu0 %vm85_vm1, %v57_v1  ;;  %v61_v4 = vld [vmem:[%s1352_s4] sm:$0xff]  ;;  %v1083_v5 = vmov 0   ;;  %v63_v6 = vld [vmem:[%s1352_s4 + $0x10] sm:$0xff]  ;;  %v60_v7 = vld [vmem:[%s1351_s3 + $0x18] sm:$0xff] }
   0x4   :  { %1055 = vset.pattern.permute.xlu0 %v1083_v5  ;;  %1056 = vset.pattern.permute.xlu1 %v1083_v5  ;;  %v62_v8 = vld [vmem:[%s1352_s4 + $0x8] sm:$0xff]  ;;  %v64_v9 = vld [vmem:[%s1352_s4 + $0x18] sm:$0xff] }
   0x5   :  { %67 = vperm.xlu0 %1055, %v61_v4   ;;  %77 = vperm.xlu1 %1056, %v63_v6  }
   0x8   :  { %v54_v0 = vld [vmem:[%s1366_s23] sm:$0xf] }
   0x9   :  { %944 = vmatprep.subr.msk.mxu0 %vm98_vm0, %v54_v0  ;;  %72 = vperm.xlu0 %1055, %v62_v8  }
   0xa   :  { %945 = vmatpush3.msk.msra.mxu0 %vm98_vm0, %v54_v0 }
   0xb   :  { %947 = vmatmul.mubr.msk.f32.vlgmr.msra.gmra.mrb[0].mxu0 %vm85_vm1, %v58_v2 }
   0xc   :  { %949 = vmatprep.mubr.msk.f32.mxu0 %vm85_vm1, %v59_v3 }
   0xf   :  { %950 = vmatmul.mubr.msk.f32.gmra.mrb[2].mxu0 %vm85_vm1, %v60_v7 }
  0x10   :  { %21 = vsyncpa [#allocation3], 0  ;;  %v195_v10 = vld [vmem:[%s1354_s6] sm:$0xff]  ;;  %82 = vperm.xlu1 %1056, %v64_v9   ;;  %v196_v11 = vld [vmem:[%s1354_s6 + $0x8] sm:$0xff]  ;;  %vm219_vm2 = vcmask 261120   ;;  %v1084_v46 = vmov 0.0|0.0  }
  0x11   :  { %201 = vperm.xlu0 %1055, %v195_v10   ;;  %v197_v12 = vld [vmem:[%s1354_s6 + $0x10] sm:$0xff]  ;;  %v198_v13 = vld [vmem:[%s1354_s6 + $0x18] sm:$0xff]  ;;  %v322_v14 = vld [vmem:[%s1356_s8] sm:$0xf]  ;;  %1026 = vmatprep.subr.bf16.mxu0 %v1084_v46  ;;  %vm1085_vm3 = vmmov 0   ;;  %v1086_v47 = vmov 0.0  }
  0x12   :  { %v619_v15 = vld [vmem:[%s1359_s11] sm:$0xff]  ;;  %v620_v16 = vld [vmem:[%s1359_s11 + $0x8] sm:$0xff]  ;;  %v621_v17 = vld [vmem:[%s1359_s11 + $0x10] sm:$0xff]  ;;  %974 = vmatprep.mubr.msk.f32.mxu0 %vm1085_vm3, %v1086_v47  ;;  %vm430_vm4 = vcmask 1041408   ;;  %vm417_vm5 = vcmask 15360   ;;  %s1087_s6 = smov [#allocation2]  }
  0x13   :  { %v622_v18 = vld [vmem:[%s1359_s11 + $0x18] sm:$0xff]  ;;  %v655_v19 = vld [vmem:[%s1361_s13] sm:$0xff]  ;;  %v656_v20 = vld [vmem:[%s1361_s13 + $0x8] sm:$0xff]  ;;  %s870_s24 = sshll.u32 %s1087_s6, 4  ;;  %s871_s24 = int_to_ptr.vmem [resolvable:$true] %s870_s24 }
  0x14   :  { %206 = vperm.xlu1 %1056, %v196_v11   ;;  %v657_v21 = vld [vmem:[%s1361_s13 + $0x10] sm:$0xff]  ;;  %v658_v22 = vld [vmem:[%s1361_s13 + $0x18] sm:$0xff]  ;;  %v781_v23 = vld [vmem:[%s1363_s15] sm:$0x3]  ;;  %s1059_s8 = scalar_lea.vmem %s871_s24, 128  ;;  %p1064_p1 = scmp.lt.s32.totalorder %s871_s24, %s871_s24 }
  0x15   :  { %211 = vperm.xlu0 %1055, %v197_v12   ;;  %v191_v24 = vld [vmem:[%s1353_s5] sm:$0xff]  ;;  %v192_v43 = vld [vmem:[%s1353_s5 + $0x8] sm:$0xff]  ;;  %v193_v44 = vld [vmem:[%s1353_s5 + $0x10] sm:$0xff]  ;;  %p1060_p0 = scmp.ne.s32.totalorder %s871_s24, %s1059_s8  ;;  %p1065_p2 = scmp.lt.s32.totalorder %s1059_s8, %s1059_s8 }
  0x16   :  { %960 = vmatprep.mubr.msk.f32.mxu1 %vm219_vm2, %v191_v24  ;;  %v194_v45 = vld [vmem:[%s1353_s5 + $0x18] sm:$0xff]  ;;  %v321_v2 = vld [vmem:[%s1355_s7] sm:$0xf]  ;;  %v414_v5 = vld [vmem:[%s1358_s10 + $0x8] sm:$0xff] }
  0x17   :  { %v55_v3 = vld [vmem:[%s1349_s1] sm:$0x3]  ;;  %v415_v6 = vld [vmem:[%s1358_s10 + $0x10] sm:$0xff]  ;;  %v416_v7 = vld [vmem:[%s1358_s10 + $0x18] sm:$0xff]  ;;  %p1066_p3 = por %p1065_p2, %p1064_p1 }
  0x18   :  { %216 = vperm.xlu1 %1056, %v198_v13   ;;  %v413_v4 = vld [vmem:[%s1358_s10] sm:$0xff] }
  0x19   :  { %325 = vperm.xlu0 %1055, %v322_v14   ;;  %v409_v8 = vld [vmem:[%s1357_s9] sm:$0xff]  ;;  %p1067_p4 = pnand %p1066_p3, %p1060_p0 }
  0x1c   :  { %625 = vperm.xlu1 %1056, %v619_v15  }
  0x1d   :  { %630 = vperm.xlu0 %1055, %v620_v16   ;;  %v56_v16 = vld [vmem:[%s1350_s2] sm:$0x3] }
  0x20   :  { %635 = vperm.xlu1 %1056, %v621_v17  }
  0x21   :  { %640 = vperm.xlu0 %1055, %v622_v18  }
  0x24   :  { %661 = vperm.xlu1 %1056, %v655_v19  }
  0x25   :  { %666 = vperm.xlu0 %1055, %v656_v20   ;;  %v410_v20 = vld [vmem:[%s1357_s9 + $0x8] sm:$0xff] }
  0x28   :  { %671 = vperm.xlu1 %1056, %v657_v21   ;;  %v411_v21 = vld [vmem:[%s1357_s9 + $0x10] sm:$0xff] }
  0x29   :  { %676 = vperm.xlu0 %1055, %v658_v22   ;;  %v412_v22 = vld [vmem:[%s1357_s9 + $0x18] sm:$0xff] }
  0x2c   :  { %784 = vperm.xlu1 %1056, %v781_v23   ;;  %v651_v23 = vld [vmem:[%s1360_s12] sm:$0xff] }
  0x84   :  { %v68_v25 = vpop.permute.xlu0 %67  ;;  %v78_v26 = vpop.permute.xlu1 %77 }
  0x88   :  { %v73_v27 = vpop.permute.xlu0 %72 }
  0x8f   :  { %v83_v33 = vpop.permute.xlu1 %82 }
  0x90   :  { %v202_v49 = vpop.permute.xlu0 %201 }
  0x93   :  { %v207_v48 = vpop.permute.xlu1 %206 }
  0x94   :  { %v212_v58 = vpop.permute.xlu0 %211 }
  0x97   :  { %v217_v55 = vpop.permute.xlu1 %216 }
  0x98   :  { %v326_v9 = vpop.permute.xlu0 %325 }
  0x9c   :  { %v631_v24 = vpop.permute.xlu0 %630 }
  0xde   :  { %v948_v28 = vpop.f32.mrb[0].mxu0 }
  0xdf   :  { %v174_v29 = vadd.f32 %v948_v28, %v73_v27  ;;  %v168_v30 = vpop.f32.mrb[1].mxu0 }
  0xe0   :  { %v169_v31 = vadd.f32 %v168_v30, %v68_v25  ;;  %v626_v25 = vpop.permute.xlu1 %625 }
  0xe1   :  { %v188_v32 = vmax.f32 %v174_v29, 0.0 }
  0xe2   :  { %v187_v34 = vmax.f32 %v169_v31, 0.0  ;;  %v951_v35 = vpop.f32.mrb[2].mxu0  ;;  %v641_v31 = vpop.permute.xlu0 %640 }
  0xe3   :  { %v184_v36 = vadd.f32 %v951_v35, %v83_v33  ;;  %v178_v37 = vpop.f32.mrb[3].mxu0 }
  0xe4   :  { %v179_v38 = vadd.f32 %v178_v37, %v78_v26  ;;  %v1018_v39 = vpack.c.bf16 %v188_v32, %v187_v34  ;;  %v636_v34 = vpop.permute.xlu1 %635 }
  0xe5   :  { %v190_v40 = vmax.f32 %v184_v36, 0.0 }
  0xe6   :  { %v189_v41 = vmax.f32 %v179_v38, 0.0  ;;  %1019 = vmatprep.subr.bf16.mxu1 %v1018_v39 }
  0xe7   :  { %1021 = vmatpush3.bf16.msra.mxu1 %v1018_v39 }
  0xe8   :  { %v1022_v42 = vpack.c.bf16 %v190_v40, %v189_v41 }
  0xea   :  { %1023 = vmatprep.subr.bf16.mxu1 %v1022_v42 }
  0xeb   :  { %1025 = vmatpush3.bf16.msra.mxu1 %v1022_v42  ;;  %v652_v42 = vld [vmem:[%s1360_s12 + $0x8] sm:$0xff] }
  0xee   :  { %961 = vmatmul.mubr.msk.f32.vlgmr.msra.gmra.mrb[0].mxu1 %vm219_vm2, %v192_v43  ;;  %v653_v43 = vld [vmem:[%s1360_s12 + $0x10] sm:$0xff] }
  0xef   :  { %963 = vmatprep.mubr.msk.f32.mxu1 %vm219_vm2, %v193_v44  ;;  %v654_v44 = vld [vmem:[%s1360_s12 + $0x18] sm:$0xff] }
  0xf2   :  { %964 = vmatmul.mubr.msk.f32.gmra.mrb[2].mxu1 %vm219_vm2, %v194_v45  ;;  %v667_v45 = vpop.permute.xlu0 %666 }
  0xf3   :  { %1001 = vmatprep.mubr.msk.f32.mxu1 %vm219_vm2, %v651_v23 }
 0x1c1   :  { %v962_v50 = vpop.f32.mrb[0].mxu1 }
 0x1c2   :  { %v304_v51 = vadd.f32 %v962_v50, %v207_v48  ;;  %v298_v52 = vpop.f32.mrb[1].mxu1  ;;  %v662_v48 = vpop.permute.xlu1 %661 }
 0x1c3   :  { %v299_v53 = vadd.f32 %v298_v52, %v202_v49 }
 0x1c4   :  { %v318_v54 = vmax.f32 %v304_v51, 0.0 }
 0x1c5   :  { %v317_v56 = vmax.f32 %v299_v53, 0.0  ;;  %v965_v57 = vpop.f32.mrb[2].mxu1 }
 0x1c6   :  { %v314_v59 = vadd.f32 %v965_v57, %v217_v55  ;;  %v308_v60 = vpop.f32.mrb[3].mxu1  ;;  %v672_v57 = vpop.permute.xlu1 %671 }
 0x1c7   :  { %v1027_v61 = vpack.c.bf16 %v318_v54, %v317_v56  ;;  %v309_v62 = vadd.f32 %v308_v60, %v212_v58  ;;  %v677_v54 = vpop.permute.xlu0 %676 }
 0x1c8   :  { %v320_v63 = vmax.f32 %v314_v59, 0.0 }
 0x1c9   :  { %v319_v0 = vmax.f32 %v309_v62, 0.0  ;;  %1028 = vmatpush3.bf16.msra.mxu0 %v1027_v61 }
 0x1ca   :  { %1029 = vmatprep.subr.bf16.mxu0 %v1084_v46 }
 0x1cb   :  { %v1030_v1 = vpack.c.bf16 %v320_v63, %v319_v0  ;;  %v780_v0 = vld [vmem:[%s1362_s14] sm:$0x3] }
 0x1cd   :  { %1031 = vmatpush3.bf16.msra.mxu0 %v1030_v1  ;;  %v785_v1 = vpop.permute.xlu1 %784 }
 0x1ce   :  { %977 = vmatprep.subr.msk.mxu0 %vm430_vm4, %v55_v3 }
 0x1d0   :  { %975 = vmatmul.mubr.msk.f32.vlgmr.msra.gmra.mrb[4].mxu0 %vm219_vm2, %v321_v2 }
 0x1d1   :  { %979 = vmatprep.mubr.msk.f32.mxu0 %vm417_vm5, %v413_v4  ;;  %978 = vmatpush3.msk.msra.mxu0 %vm430_vm4, %v55_v3 }
 0x1d4   :  { %980 = vmatmul.mubr.msk.f32.vlgmr.msra.gmra.mrb[6].mxu0 %vm417_vm5, %v414_v5 }
 0x1d5   :  { %982 = vmatprep.mubr.msk.f32.mxu0 %vm417_vm5, %v415_v6 }
 0x1d8   :  { %983 = vmatmul.mubr.msk.f32.gmra.mrb[8].mxu0 %vm417_vm5, %v416_v7 }
 0x1d9   :  { %987 = vmatprep.mubr.msk.f32.mxu0 %vm417_vm5, %v409_v8 }
 0x2a3   :  { %v397_v10 = vpop.f32.mrb[4].mxu0 }
 0x2a4   :  { %v398_v11 = vadd.f32 %v397_v10, %v326_v9  ;;  %v976_v12 = vpop.f32.mrb[5].mxu0 }
 0x2a6   :  { %v401_v13 = vmul.f32 0.5, %v398_v11  ;;  %862 = vst [vmem:[#allocation2 + $0x2] sm:$0xf] %v398_v11  }
 0x2a8   :  { %v402_v14 = vmul.f32 1.442695, %v401_v13 }
 0x2aa   :  { %1057 = vpow2.f32 %v402_v14 }
 0x2b4   :  { %v1058_v15 = vpop.eup %1057 }
 0x2b5   :  { %v405_v17 = vrot.slane %v1058_v15, 2 }
 0x2b7   :  { %v407_v18 = vmul.f32 %v405_v17, %v56_v16 }
 0x2b9   :  { %v408_v19 = vadd.f32 %v407_v18, %v398_v11 }
 0x2bb   :  { %985 = vmatprep.subr.msk.mxu0 %vm430_vm4, %v408_v19 }
 0x2bc   :  { %986 = vmatpush3.msk.msra.mxu0 %vm430_vm4, %v408_v19 }
 0x2bd   :  { %988 = vmatmul.mubr.msk.f32.vlgmr.msra.gmra.mrb[6].mxu0 %vm417_vm5, %v410_v20 }
 0x2be   :  { %990 = vmatprep.mubr.msk.f32.mxu0 %vm417_vm5, %v411_v21 }
 0x2c1   :  { %991 = vmatmul.mubr.msk.f32.gmra.mrb[8].mxu0 %vm417_vm5, %v412_v22 }
 0x390   :  { %v989_v26 = vpop.f32.mrb[6].mxu0 }
 0x391   :  { %v644_v27 = vadd.f32 %v989_v26, %v631_v24  ;;  %v600_v28 = vpop.f32.mrb[7].mxu0 }
 0x392   :  { %v643_v29 = vadd.f32 %v626_v25, %v600_v28 }
 0x393   :  { %v648_v30 = vmax.f32 %v644_v27, 0.0 }
 0x394   :  { %v647_v32 = vmax.f32 %v643_v29, 0.0  ;;  %v992_v33 = vpop.f32.mrb[8].mxu0 }
 0x395   :  { %v646_v35 = vadd.f32 %v992_v33, %v641_v31  ;;  %v610_v36 = vpop.f32.mrb[9].mxu0 }
 0x396   :  { %v1032_v37 = vpack.c.bf16 %v648_v30, %v647_v32  ;;  %v645_v38 = vadd.f32 %v636_v34, %v610_v36 }
 0x397   :  { %v650_v39 = vmax.f32 %v646_v35, 0.0 }
 0x398   :  { %v649_v40 = vmax.f32 %v645_v38, 0.0  ;;  %1033 = vmatprep.subr.bf16.mxu1 %v1032_v37 }
 0x399   :  { %1035 = vmatpush3.bf16.msra.mxu1 %v1032_v37 }
 0x39a   :  { %v1036_v41 = vpack.c.bf16 %v650_v39, %v649_v40 }
 0x39c   :  { %1037 = vmatprep.subr.bf16.mxu1 %v1036_v41 }
 0x39d   :  { %1039 = vmatpush3.bf16.msra.mxu1 %v1036_v41 }
 0x39e   :  { %1040 = vmatprep.subr.bf16.mxu1 %v1084_v46 }
 0x3a0   :  { %1002 = vmatmul.mubr.msk.f32.vlgmr.msra.gmra.mrb[4].mxu1 %vm219_vm2, %v652_v42 }
 0x3a1   :  { %1004 = vmatprep.mubr.msk.f32.mxu1 %vm219_vm2, %v653_v43 }
 0x3a4   :  { %1005 = vmatmul.mubr.msk.f32.gmra.mrb[6].mxu1 %vm219_vm2, %v654_v44 }
 0x3a5   :  { %1015 = vmatprep.mubr.msk.f32.mxu1 %vm1085_vm3, %v1086_v47 }
 0x473   :  { %v1003_v49 = vpop.f32.mrb[4].mxu1 }
 0x474   :  { %v763_v50 = vadd.f32 %v1003_v49, %v667_v45  ;;  %v757_v51 = vpop.f32.mrb[5].mxu1 }
 0x475   :  { %v758_v52 = vadd.f32 %v757_v51, %v662_v48 }
 0x476   :  { %v777_v53 = vmax.f32 %v763_v50, 0.0 }
 0x477   :  { %v776_v55 = vmax.f32 %v758_v52, 0.0  ;;  %v1006_v56 = vpop.f32.mrb[6].mxu1 }
 0x478   :  { %v773_v58 = vadd.f32 %v1006_v56, %v677_v54  ;;  %v767_v59 = vpop.f32.mrb[7].mxu1 }
 0x479   :  { %v1041_v60 = vpack.c.bf16 %v777_v53, %v776_v55  ;;  %v768_v61 = vadd.f32 %v767_v59, %v672_v57 }
 0x47a   :  { %v779_v62 = vmax.f32 %v773_v58, 0.0 }
 0x47b   :  { %v778_v63 = vmax.f32 %v768_v61, 0.0  ;;  %1042 = vmatpush3.bf16.msra.mxu1 %v1041_v60 }
 0x47c   :  { %1043 = vmatprep.subr.bf16.mxu1 %v1084_v46 }
 0x47d   :  { %v1044_v47 = vpack.c.bf16 %v779_v62, %v778_v63 }
 0x47f   :  { %1045 = vmatpush3.bf16.msra.mxu1 %v1044_v47 }
 0x482   :  { %1016 = vmatmul.mubr.msk.f32.vlgmr.msra.gmra.mrb[8].mxu1 %vm219_vm2, %v780_v0 }
 0x555   :  { %v856_v2 = vpop.f32.mrb[8].mxu1 }
 0x556   :  { %v857_v3 = vadd.f32 %v856_v2, %v785_v1  ;;  %v1017_v4 = vpop.f32.mrb[9].mxu1 }
 0x558   :  { %v860_v5 = vmax.f32 %v857_v3, 0.0 }
 0x55a   :  { %861 = vst [vmem:[#allocation2] sm:$0x3] %v860_v5 }
 0x55b   :  { %1070 = shalt.err (!%p1067_p4)
}
 0x55c   :  { %s1071_s26 = scalar_lea.hbm %s1364_s16, 128 }
 0x55d   :  { %p1072_p5 = scmp.ne.s32.totalorder %s1364_s16, %s1071_s26  ;;  %p1075_p6 = scmp.lt.u32.totalorder %s1071_s26, %s1364_s16 }
 0x55f   :  { %p1077_p7 = pnand %p1075_p6, %p1072_p5 }
 0x561   :  { %1080 = shalt.err (!%p1077_p7)
}
 0x562   :  { %873 = dma.vmem_to_hbm [thread:$0]  %s871_s24, 128, %s1364_s16, [#allocation3]  }
 0x563   :  { %1081 = dma.done.wait [#allocation3], 128  }
 0x564   :  { %1082 = vsyncadd [#allocation3], 4294967168 }
 0x565   :  { %877 = vsyncpa [#allocation3], 1 }

</bundles_post_ra>
